<compile_context>
chip_gen: v7x
topology: tpu7x:2x2x1
jax: 0.10.0
libtpu: 0.0.40
codegen_flags: <defaults>
</compile_context>

<pallas_src>
import numpy as np
import jax
import jax.numpy as jnp
from jax.experimental import pallas as pl
from jax.experimental.pallas import tpu as pltpu


# ----------------------------- configuration ------------------------------
N_INPUT = 16          # len(source_inds) == len(candidate_inds)
PREINT_HIDDEN = 16    # InteractionNet_preint_n_hidden (> 0 path; == N_INPUT
                      # so the original module's shape assert holds)
N_INTS_OUT = 100      # logical fc_ints out_features
N_INTS_PAD = 128      # padded to a full 128-lane tile (pads are zero)
BATCH = 16
MAX_TILE_B = 512      # batch tile cap if the batch ever grows
INCLUDE_SHARED = False


# ------------------------------- kernel -----------------------------------
def interaction_kernel(x_ref, wpre_ref, bpre_ref, e_ref,
                       wi_ref, bi_ref, wf_ref, out_ref):
    H = PREINT_HIDDEN
    HH = H * H

    # fused pre-interaction projections + ReLU:  h = [hs | hc]
    h = jnp.dot(x_ref[...], wpre_ref[...], preferred_element_type=jnp.float32)
    h = jnp.maximum(h + bpre_ref[...], 0.0)                          # (tb, 2H)

    # single expansion matmul -> [s_rep | c_til]; elementwise product of the
    # two 128-aligned halves is the flattened outer product hs ⊗ hc.
    se = jnp.dot(h, e_ref[...], preferred_element_type=jnp.float32)  # (tb, 2*H*H)
    ints = se[:, :HH] * se[:, HH:]                                   # (tb, H*H)

    # fc_ints: bf16 MXU operands, f32 accumulate; bias + ReLU in f32.
    h1 = jnp.dot(ints.astype(jnp.bfloat16), wi_ref[...],
                 preferred_element_type=jnp.float32)                 # (tb, 128)
    h1 = jnp.maximum(h1 + bi_ref[...], 0.0)

    # fc_final (no bias, single output): VPU multiply + lane reduce.
    out_ref[...] = jnp.sum(h1 * wf_ref[...], axis=-1, keepdims=True)  # (tb, 1)


# --------------------------- parameter preparation --------------------------
def prepare_params(params):
    """Fold the logical PyTorch-style params into the fused kernel layout."""
    ws, bs, wc, bc, wi, bi, wf = params
    H = PREINT_HIDDEN

    # block-diagonal fused pre-interaction weight / concatenated bias
    w_pre = np.zeros((2 * N_INPUT, 2 * H), np.float32)
    w_pre[:N_INPUT, :H] = np.asarray(ws)
    w_pre[N_INPUT:, H:] = np.asarray(wc)
    b_pre = np.concatenate([np.asarray(bs), np.asarray(bc)], axis=1)  # (1, 2H)

    # expansion matrix: se = h @ E gives [s_rep | c_til]
    cols = np.arange(H * H)
    e = np.zeros((2 * H, 2 * H * H), np.float32)
    e[:H, :H * H] = (np.arange(H)[:, None] == (cols[None, :] // H))
    e[H:, H * H:] = (np.arange(H)[:, None] == (cols[None, :] % H))

    # zero-pad fc_ints / fc_final from 100 -> 128 output lanes
    wi_p = np.zeros((H * H, N_INTS_PAD), np.float32)
    wi_p[:, :N_INTS_OUT] = np.asarray(wi)
    bi_p = np.zeros((1, N_INTS_PAD), np.float32)
    bi_p[:, :N_INTS_OUT] = np.asarray(bi)
    wf_p = np.zeros((1, N_INTS_PAD), np.float32)
    wf_p[0, :N_INTS_OUT] = np.asarray(wf)[:, 0]

    return (jnp.asarray(w_pre), jnp.asarray(b_pre), jnp.asarray(e),
            jnp.asarray(wi_p, dtype=jnp.bfloat16),   # bf16 MXU operand
            jnp.asarray(bi_p), jnp.asarray(wf_p))


# ------------------------------- wrapper -----------------------------------
def interaction_net_forward(x, prepped):
    """x: (B, 2*N_INPUT) float32. Returns (B, 1) float32."""
    B = x.shape[0]
    H = PREINT_HIDDEN
    tile_b = B if B <= MAX_TILE_B else MAX_TILE_B
    assert B % tile_b == 0

    # feature gather (glue, plain JAX): source = first N_INPUT cols,
    # candidate = next N_INPUT cols (our synthetic feature_manager layout).
    x32 = jnp.concatenate([x[:, :N_INPUT], x[:, N_INPUT:2 * N_INPUT]], axis=1)

    w_pre, b_pre, e, wi, bi, wf = prepped

    full = lambda i: (0, 0)          # replicated (whole-array) blocks
    batch_blk = lambda i: (i, 0)

    grid_spec = pl.GridSpec(
        grid=(B // tile_b,),
        in_specs=[
            pl.BlockSpec((tile_b, 2 * N_INPUT), batch_blk),      # x32
            pl.BlockSpec((2 * N_INPUT, 2 * H), full),            # w_pre
            pl.BlockSpec((1, 2 * H), full),                      # b_pre
            pl.BlockSpec((2 * H, 2 * H * H), full),              # E
            pl.BlockSpec((H * H, N_INTS_PAD), full),             # wi (bf16)
            pl.BlockSpec((1, N_INTS_PAD), full),                 # bi
            pl.BlockSpec((1, N_INTS_PAD), full),                 # wf row
        ],
        out_specs=pl.BlockSpec((tile_b, 1), batch_blk),
    )

    return pl.pallas_call(
        interaction_kernel,
        out_shape=jax.ShapeDtypeStruct((B, 1), jnp.float32),
        grid_spec=grid_spec,
        compiler_params=pltpu.CompilerParams(
            dimension_semantics=("parallel",)),
    )(x32, w_pre, b_pre, e, wi, bi, wf)


# ------------------------- deterministic parameters -------------------------
def make_params(key):
    H = PREINT_HIDDEN
    ks = jax.random.split(key, 7)
    # "math" orientation: (in_features, out_features); scale ~ 1/sqrt(fan_in)
    ws = jax.random.uniform(ks[0], (N_INPUT, H), jnp.float32, -1, 1) / np.sqrt(N_INPUT)
    bs = jax.random.uniform(ks[1], (1, H), jnp.float32, -1, 1) / np.sqrt(N_INPUT)
    wc = jax.random.uniform(ks[2], (N_INPUT, H), jnp.float32, -1, 1) / np.sqrt(N_INPUT)
    bc = jax.random.uniform(ks[3], (1, H), jnp.float32, -1, 1) / np.sqrt(N_INPUT)
    wi = jax.random.uniform(ks[4], (H * H, N_INTS_OUT), jnp.float32, -1, 1) / np.sqrt(H * H)
    bi = jax.random.uniform(ks[5], (1, N_INTS_OUT), jnp.float32, -1, 1) / np.sqrt(H * H)
    wf = jax.random.uniform(ks[6], (N_INTS_OUT, 1), jnp.float32, -1, 1) / np.sqrt(N_INTS_OUT)
    return (ws, bs, wc, bc, wi, bi, wf)


def reference_forward(x, params):
    """Pure-JAX f32 reference mirroring the PyTorch forward exactly."""
    (ws, bs, wc, bc, wi, bi, wf) = params
    H = PREINT_HIDDEN
    xs = x[:, :N_INPUT]
    xc = x[:, N_INPUT:2 * N_INPUT]
    hs = jax.nn.relu(xs @ ws + bs)
    hc = jax.nn.relu(xc @ wc + bc)
    ints = (hs[:, :, None] * hc[:, None, :]).reshape(x.shape[0], H * H)
    h1 = jax.nn.relu(ints @ wi + bi)
    return h1 @ wf


# --------------------------------- main -------------------------------------
if __name__ == "__main__":
    key = jax.random.PRNGKey(0)
    k_x, k_p = jax.random.split(key)
    x = jax.random.normal(k_x, (BATCH, 2 * N_INPUT), jnp.float32)
    params = make_params(k_p)
    prepped = prepare_params(params)

    out = jax.block_until_ready(interaction_net_forward(x, prepped))
    ref = jax.block_until_ready(reference_forward(x, params))

    assert out.shape == (BATCH, 1)
    # tolerance relaxed because fc_ints uses bf16 MXU operands (f32 accumulate)
    assert np.allclose(np.asarray(out), np.asarray(ref), rtol=2e-2, atol=2e-2), \
        "Pallas kernel does not match reference"

    print("KERNEL_OK")
</pallas_src>

<mosaic_0001>
module attributes {stable_mosaic.version = 11 : i64} {
  func.func @interaction_kernel(%arg0: i32, %arg1: memref<16x32xf32, #tpu.memory_space<vmem>>, %arg2: memref<32x32xf32, #tpu.memory_space<vmem>>, %arg3: memref<1x32xf32, #tpu.memory_space<vmem>>, %arg4: memref<32x512xf32, #tpu.memory_space<vmem>>, %arg5: memref<256x128xbf16, #tpu.memory_space<vmem>>, %arg6: memref<1x128xf32, #tpu.memory_space<vmem>>, %arg7: memref<1x128xf32, #tpu.memory_space<vmem>>, %arg8: memref<16x1xf32, #tpu.memory_space<vmem>>) attributes {dimension_semantics = [#tpu.dimension_semantics<parallel>], iteration_bounds = array<i64: 1>, scalar_prefetch = 0 : i64, scratch_operands = 0 : i64, tpu.core_type = #tpu.core_type<tc>, window_params = [{transform_indices = @transform_0, window_bounds = array<i64: 16, 32>}, {pipeline_mode = #tpu.pipeline_mode<synchronous>, transform_indices = @transform_1, window_bounds = array<i64: 32, 32>}, {pipeline_mode = #tpu.pipeline_mode<synchronous>, transform_indices = @transform_2, window_bounds = array<i64: 1, 32>}, {pipeline_mode = #tpu.pipeline_mode<synchronous>, transform_indices = @transform_3, window_bounds = array<i64: 32, 512>}, {pipeline_mode = #tpu.pipeline_mode<synchronous>, transform_indices = @transform_4, window_bounds = array<i64: 256, 128>}, {pipeline_mode = #tpu.pipeline_mode<synchronous>, transform_indices = @transform_5, window_bounds = array<i64: 1, 128>}, {pipeline_mode = #tpu.pipeline_mode<synchronous>, transform_indices = @transform_6, window_bounds = array<i64: 1, 128>}, {transform_indices = @transform_7, window_bounds = array<i64: 16, 1>}]} {
    %c0 = arith.constant 0 : index
    %c0_0 = arith.constant 0 : index
    %0 = vector.load %arg1[%c0, %c0_0] : memref<16x32xf32, #tpu.memory_space<vmem>>, vector<16x32xf32>
    %c0_1 = arith.constant 0 : index
    %c0_2 = arith.constant 0 : index
    %1 = vector.load %arg2[%c0_1, %c0_2] : memref<32x32xf32, #tpu.memory_space<vmem>>, vector<32x32xf32>
    %cst = arith.constant dense<0.000000e+00> : vector<16x32xf32>
    %2 = tpu.matmul %0, %1, %cst {dimension_numbers = #tpu.dot_dimension_numbers<[1], [0], [0], [1], [0, 0, 1, 1], [], []>} : vector<16x32xf32>, vector<32x32xf32>, vector<16x32xf32> -> vector<16x32xf32>
    %c0_3 = arith.constant 0 : index
    %c0_4 = arith.constant 0 : index
    %3 = vector.load %arg3[%c0_3, %c0_4] : memref<1x32xf32, #tpu.memory_space<vmem>>, vector<1x32xf32>
    %4 = vector.broadcast %3 : vector<1x32xf32> to vector<16x32xf32>
    %5 = arith.addf %2, %4 : vector<16x32xf32>
    %cst_5 = arith.constant 0.000000e+00 : f32
    %6 = vector.broadcast %cst_5 : f32 to vector<16x32xf32>
    %7 = arith.maximumf %5, %6 : vector<16x32xf32>
    %c0_6 = arith.constant 0 : index
    %c0_7 = arith.constant 0 : index
    %8 = vector.load %arg4[%c0_6, %c0_7] : memref<32x512xf32, #tpu.memory_space<vmem>>, vector<32x512xf32>
    %cst_8 = arith.constant dense<0.000000e+00> : vector<16x512xf32>
    %9 = tpu.matmul %7, %8, %cst_8 {dimension_numbers = #tpu.dot_dimension_numbers<[1], [0], [0], [1], [0, 0, 1, 1], [], []>} : vector<16x32xf32>, vector<32x512xf32>, vector<16x512xf32> -> vector<16x512xf32>
    %10 = vector.extract_strided_slice %9 {offsets = [0, 0], sizes = [16, 256], strides = [1, 1]} : vector<16x512xf32> to vector<16x256xf32>
    %11 = vector.extract_strided_slice %9 {offsets = [0, 256], sizes = [16, 256], strides = [1, 1]} : vector<16x512xf32> to vector<16x256xf32>
    %12 = arith.mulf %10, %11 : vector<16x256xf32>
    %13 = arith.truncf %12 : vector<16x256xf32> to vector<16x256xbf16>
    %c0_9 = arith.constant 0 : index
    %c0_10 = arith.constant 0 : index
    %14 = vector.load %arg5[%c0_9, %c0_10] : memref<256x128xbf16, #tpu.memory_space<vmem>>, vector<256x128xbf16>
    %cst_11 = arith.constant dense<0.000000e+00> : vector<16x128xf32>
    %15 = tpu.matmul %13, %14, %cst_11 {dimension_numbers = #tpu.dot_dimension_numbers<[1], [0], [0], [1], [0, 0, 1, 1], [], []>} : vector<16x256xbf16>, vector<256x128xbf16>, vector<16x128xf32> -> vector<16x128xf32>
    %c0_12 = arith.constant 0 : index
    %c0_13 = arith.constant 0 : index
    %16 = vector.load %arg6[%c0_12, %c0_13] : memref<1x128xf32, #tpu.memory_space<vmem>>, vector<1x128xf32>
    %17 = vector.broadcast %16 : vector<1x128xf32> to vector<16x128xf32>
    %18 = arith.addf %15, %17 : vector<16x128xf32>
    %cst_14 = arith.constant 0.000000e+00 : f32
    %19 = vector.broadcast %cst_14 : f32 to vector<16x128xf32>
    %20 = arith.maximumf %18, %19 : vector<16x128xf32>
    %c0_15 = arith.constant 0 : index
    %c0_16 = arith.constant 0 : index
    %21 = vector.load %arg7[%c0_15, %c0_16] : memref<1x128xf32, #tpu.memory_space<vmem>>, vector<1x128xf32>
    %22 = vector.broadcast %21 : vector<1x128xf32> to vector<16x128xf32>
    %23 = arith.mulf %20, %22 : vector<16x128xf32>
    %cst_17 = arith.constant dense<0.000000e+00> : vector<16xf32>
    %24 = vector.multi_reduction <add>, %23, %cst_17 [1] : vector<16x128xf32> to vector<16xf32>
    %25 = vector.shape_cast %24 : vector<16xf32> to vector<16x1xf32>
    %c0_18 = arith.constant 0 : index
    %c0_19 = arith.constant 0 : index
    %26 = vector.load %arg8[%c0_18, %c0_19] : memref<16x1xf32, #tpu.memory_space<vmem>>, vector<16x1xf32>
    tpu.vector_store %arg8[%c0_18, %c0_19], %25 {strides = array<i32>} : memref<16x1xf32, #tpu.memory_space<vmem>>, vector<16x1xf32>,
    return
  }
  func.func @transform_0(%arg0: i32) -> (i32, i32) {
    %c0_i32 = arith.constant 0 : i32
    %c0_i32_0 = arith.constant 0 : i32
    return %arg0, %c0_i32 : i32, i32
  }
  func.func @transform_1(%arg0: i32) -> (i32, i32) {
    %c0_i32 = arith.constant 0 : i32
    %c0_i32_0 = arith.constant 0 : i32
    %c0_i32_1 = arith.constant 0 : i32
    return %c0_i32, %c0_i32_0 : i32, i32
  }
  func.func @transform_2(%arg0: i32) -> (i32, i32) {
    %c0_i32 = arith.constant 0 : i32
    %c0_i32_0 = arith.constant 0 : i32
    %c0_i32_1 = arith.constant 0 : i32
    return %c0_i32, %c0_i32_0 : i32, i32
  }
  func.func @transform_3(%arg0: i32) -> (i32, i32) {
    %c0_i32 = arith.constant 0 : i32
    %c0_i32_0 = arith.constant 0 : i32
    %c0_i32_1 = arith.constant 0 : i32
    return %c0_i32, %c0_i32_0 : i32, i32
  }
  func.func @transform_4(%arg0: i32) -> (i32, i32) {
    %c0_i32 = arith.constant 0 : i32
    %c0_i32_0 = arith.constant 0 : i32
    %c0_i32_1 = arith.constant 0 : i32
    return %c0_i32, %c0_i32_0 : i32, i32
  }
  func.func @transform_5(%arg0: i32) -> (i32, i32) {
    %c0_i32 = arith.constant 0 : i32
    %c0_i32_0 = arith.constant 0 : i32
    %c0_i32_1 = arith.constant 0 : i32
    return %c0_i32, %c0_i32_0 : i32, i32
  }
  func.func @transform_6(%arg0: i32) -> (i32, i32) {
    %c0_i32 = arith.constant 0 : i32
    %c0_i32_0 = arith.constant 0 : i32
    %c0_i32_1 = arith.constant 0 : i32
    return %c0_i32, %c0_i32_0 : i32, i32
  }
  func.func @transform_7(%arg0: i32) -> (i32, i32) {
    %c0_i32 = arith.constant 0 : i32
    %c0_i32_0 = arith.constant 0 : i32
    return %arg0, %c0_i32 : i32, i32
  }
}

</mosaic_0001>

<bundles_post_ra>
// kernel: tpu_custom_call.1
= control target key start
LH: loop header
LB: loop body
LE: loop exit
PB: predicated region body
PF: predicated region fallthrough
CT: control target
= control target key end

     0   :  { %12 = vsyncpa [#allocation3], 0  ;;  %s898_s0 = inlined_call_operand.hbm [shape: f32[16,32], index: 0, kind: input, shape index: {}]   ;;  %s899_s1 = inlined_call_operand.hbm [shape: f32[32,32], index: 1, kind: input, shape index: {}]   ;;  %s900_s2 = inlined_call_operand.vmem [shape: f32[1,32], index: 2, kind: input, shape index: {}]   ;;  %s901_s3 = inlined_call_operand.hbm [shape: f32[32,512], index: 3, kind: input, shape index: {}]   ;;  %s902_s4 = inlined_call_operand.hbm [shape: bf16[256,128], index: 4, kind: input, shape index: {}]   ;;  %s903_s5 = inlined_call_operand.vmem [shape: f32[1,128], index: 5, kind: input, shape index: {}]   ;;  %s904_s6 = inlined_call_operand.vmem [shape: f32[1,128], index: 6, kind: input, shape index: {}]   ;;  %s905_s7 = inlined_call_operand.vmem [shape: f32[16,1], index: 7, kind: output, shape index: {}]  }
   0x1   :  { %13 = vsyncpa [#allocation5], 0 }
   0x2   :  { %14 = vsyncpa [#allocation8], 0  ;;  %s771_s24 = smov [#allocation4]   ;;  %s772_s26 = smov [#allocation2]  }
   0x3   :  { %s32_s25 = sshll.u32 %s771_s24, 4  ;;  %s20_s27 = sshll.u32 %s772_s26, 4  ;;  %s33_s25 = int_to_ptr.vmem [resolvable:$true] %s32_s25  ;;  %s822_s27 = int_to_ptr.vmem [resolvable:$true] %s20_s27 }
   0x4   :  { %s677_s30 = scalar_lea.hbm %s899_s1, 512 }
   0x5   :  { %p678_p0 = scmp.ne.s32.totalorder %s899_s1, %s677_s30  ;;  %p681_p1 = scmp.lt.u32.totalorder %s677_s30, %s899_s1 }
   0x7   :  { %p683_p2 = pnand %p681_p1, %p678_p0 }
   0x9   :  { %686 = shalt.err (!%p683_p2)
}
   0xa   :  { %s687_s12 = scalar_lea.vmem %s33_s25, 512  ;;  %p692_p4 = scmp.lt.s32.totalorder %s33_s25, %s33_s25 }
   0xb   :  { %p688_p3 = scmp.ne.s32.totalorder %s33_s25, %s687_s12  ;;  %p693_p5 = scmp.lt.s32.totalorder %s687_s12, %s687_s12 }
   0xd   :  { %p694_p6 = por %p693_p5, %p692_p4 }
   0xf   :  { %p695_p7 = pnand %p694_p6, %p688_p3 }
  0x11   :  { %698 = shalt.err (!%p695_p7)
}
  0x12   :  { %s773_s13 = smov 128   ;;  %s774_s14 = smov 8  }
  0x13   :  { %38 = dma.hbm_to_vmem [thread:$0]  %s899_s1, 512, %s33_s25, [#allocation5], %s773_s13, %s773_s13, %s774_s14  }
  0x14   :  { %s699_s19 = scalar_lea.hbm %s898_s0, 256 }
  0x15   :  { %p700_p8 = scmp.ne.s32.totalorder %s898_s0, %s699_s19  ;;  %p703_p9 = scmp.lt.u32.totalorder %s699_s19, %s898_s0 }
  0x17   :  { %p705_p10 = pnand %p703_p9, %p700_p8 }
  0x19   :  { %708 = shalt.err (!%p705_p10)
}
  0x1a   :  { %s709_s24 = scalar_lea.vmem %s822_s27, 256  ;;  %p714_p12 = scmp.lt.s32.totalorder %s822_s27, %s822_s27 }
  0x1b   :  { %p710_p11 = scmp.ne.s32.totalorder %s822_s27, %s709_s24  ;;  %p715_p13 = scmp.lt.s32.totalorder %s709_s24, %s709_s24 }
  0x1d   :  { %p716_p0 = por %p715_p13, %p714_p12 }
  0x1f   :  { %p717_p1 = pnand %p716_p0, %p710_p11 }
  0x21   :  { %720 = shalt.err (!%p717_p1)
}
  0x22   :  { %26 = dma.hbm_to_vmem [thread:$0]  %s898_s0, 256, %s822_s27, [#allocation3], %s773_s13, %s773_s13, %s774_s14  }
  0x23   :  { %s775_s26 = smov [#allocation6]   ;;  %s721_s8 = scalar_lea.hbm %s901_s3, 2048 }
  0x24   :  { %s46_s28 = sshll.u32 %s775_s26, 4  ;;  %p722_p2 = scmp.ne.s32.totalorder %s901_s3, %s721_s8  ;;  %s47_s28 = int_to_ptr.vmem [resolvable:$true] %s46_s28 }
  0x25   :  { %p725_p3 = scmp.lt.u32.totalorder %s721_s8, %s901_s3 }
  0x27   :  { %p727_p4 = pnand %p725_p3, %p722_p2 }
  0x29   :  { %730 = shalt.err (!%p727_p4)
}
  0x2a   :  { %s731_s15 = scalar_lea.vmem %s47_s28, 2048  ;;  %p736_p6 = scmp.lt.s32.totalorder %s47_s28, %s47_s28 }
  0x2b   :  { %p732_p5 = scmp.ne.s32.totalorder %s47_s28, %s731_s15  ;;  %p737_p7 = scmp.lt.s32.totalorder %s731_s15, %s731_s15 }
  0x2d   :  { %p738_p8 = por %p737_p7, %p736_p6 }
  0x2f   :  { %p739_p9 = pnand %p738_p8, %p732_p5 }
  0x31   :  { %742 = shalt.err (!%p739_p9)
}
  0x32   :  { %s776_s0 = smov 512   ;;  %s777_s27 = smov 32  }
  0x33   :  { %52 = dma.hbm_to_vmem [thread:$0]  %s901_s3, 2048, %s47_s28, [#allocation5], %s776_s0, %s776_s0, %s777_s27  }
  0x34   :  { %s778_s16 = smov [#allocation7]   ;;  %s743_s20 = scalar_lea.hbm %s902_s4, 2048 }
  0x35   :  { %s58_s17 = sshll.u32 %s778_s16, 4  ;;  %p744_p10 = scmp.ne.s32.totalorder %s902_s4, %s743_s20  ;;  %s59_s17 = int_to_ptr.vmem [resolvable:$true] %s58_s17 }
  0x36   :  { %p747_p11 = scmp.lt.u32.totalorder %s743_s20, %s902_s4 }
  0x38   :  { %p749_p12 = pnand %p747_p11, %p744_p10 }
  0x3a   :  { %752 = shalt.err (!%p749_p12)
}
  0x3b   :  { %s753_s1 = scalar_lea.vmem %s59_s17, 2048  ;;  %p758_p0 = scmp.lt.s32.totalorder %s59_s17, %s59_s17 }
  0x3c   :  { %p754_p13 = scmp.ne.s32.totalorder %s59_s17, %s753_s1  ;;  %p759_p1 = scmp.lt.s32.totalorder %s753_s1, %s753_s1 }
  0x3e   :  { %p760_p2 = por %p759_p1, %p758_p0 }
  0x40   :  { %p761_p3 = pnand %p760_p2, %p754_p13 }
  0x42   :  { %764 = shalt.err (!%p761_p3)
}
  0x43   :  { %s779_s3 = smov 64   ;;  %s780_s25 = smov 4  }
  0x44   :  { %64 = dma.hbm_to_vmem [thread:$0]  %s902_s4, 2048, %s59_s17, [#allocation8], %s779_s3, %s779_s3, %s780_s25  }
  0x45   :  { %765 = dma.done.wait [#allocation3], 256  }
  0x46   :  { %766 = vsyncadd [#allocation3], 4294967040 }
  0x47   :  { %767 = dma.done.wait [#allocation5], 2560  }
  0x48   :  { %768 = vsyncadd [#allocation5], 4294964736 }
  0x49   :  { %769 = dma.done.wait [#allocation8], 2048  }
  0x4a   :  { %770 = vsyncadd [#allocation8], 4294965248  ;;  %vm95_vm0 = vcmask 261120   ;;  %v84_v0 = vld [vmem:[#allocation4] sm:$0xff]  ;;  %v85_v1 = vld [vmem:[#allocation4 + $0x8] sm:$0xff]  ;;  %v781_v23 = vmov 0.0  }
  0x4b   :  { %v86_v2 = vld [vmem:[#allocation4 + $0x10] sm:$0xff]  ;;  %v626_v3 = vpack.c.bf16 %v85_v1, %v84_v0  ;;  %v87_v4 = vld [vmem:[#allocation4 + $0x18] sm:$0xff]  ;;  %v180_v7 = vld [vmem:[#allocation6 + $0x8] sm:$0xff]  ;;  %vm552_vm1 = vcmask 7168  }
  0x4c   :  { %v82_v5 = vld [vmem:[#allocation2] sm:$0xff]  ;;  %v630_v6 = vpack.c.bf16 %v87_v4, %v86_v2  ;;  %v184_v8 = vld [vmem:[#allocation6 + $0x28] sm:$0xff]  ;;  %v179_v9 = vld [vmem:[#allocation6] sm:$0xff] }
  0x4d   :  { %623 = vmatprep.mubr.msk.f32.mxu0 %vm95_vm0, %v82_v5  ;;  %627 = vmatprep.subr.bf16.mxu0 %v626_v3  ;;  %v183_v10 = vld [vmem:[#allocation6 + $0x20] sm:$0xff]  ;;  %v634_v11 = vpack.c.bf16 %v184_v8, %v180_v7  ;;  %v83_v12 = vld [vmem:[#allocation2 + $0x8] sm:$0xff]  ;;  %v188_v14 = vld [vmem:[#allocation6 + $0x48] sm:$0xff] }
  0x4e   :  { %629 = vmatpush3.bf16.msra.mxu0 %v626_v3  ;;  %v636_v13 = vpack.c.bf16 %v183_v10, %v179_v9  ;;  %v192_v15 = vld [vmem:[#allocation6 + $0x68] sm:$0xff]  ;;  %v187_v17 = vld [vmem:[#allocation6 + $0x40] sm:$0xff]  ;;  %v182_v20 = vld [vmem:[#allocation6 + $0x18] sm:$0xff] }
  0x4f   :  { %631 = vmatprep.subr.bf16.mxu0 %v630_v6  ;;  %v638_v16 = vpack.c.bf16 %v192_v15, %v188_v14  ;;  %v191_v18 = vld [vmem:[#allocation6 + $0x60] sm:$0xff]  ;;  %v186_v21 = vld [vmem:[#allocation6 + $0x38] sm:$0xff]  ;;  %v663_v26 = vld [vmem:[#allocation7 + $0x48] sm:$0xff]  }
  0x50   :  { %v640_v19 = vpack.c.bf16 %v191_v18, %v187_v17  ;;  %v642_v22 = vpack.c.bf16 %v186_v21, %v182_v20  ;;  %v661_v24 = vld [vmem:[#allocation7 + $0x40] sm:$0xff]   ;;  %v664_v27 = vld [vmem:[#allocation7 + $0x8] sm:$0xff]   ;;  %v665_v28 = vld [vmem:[#allocation7 + $0x50] sm:$0xff]  }
  0x51   :  { %v662_v25 = vld [vmem:[#allocation7] sm:$0xff]   ;;  %593 = vmatprep.subr.bf16.mxu1 %v661_v24  ;;  %v666_v29 = vld [vmem:[#allocation7 + $0x10] sm:$0xff]   ;;  %v667_v30 = vld [vmem:[#allocation7 + $0x58] sm:$0xff]  }
  0x52   :  { %633 = vmatpush3.bf16.msra.mxu0 %v630_v6  ;;  %594 = vmatpush3.bf16.msra.mxu1 %v662_v25  ;;  %v562_v31 = vld [vmem:[%s900_s2] ss:$0 sm:$0xff]  ;;  %v190_v36 = vld [vmem:[#allocation6 + $0x58] sm:$0xff]  ;;  %v669_v48 = vld [vmem:[#allocation7 + $0x60] sm:$0xff]  }
  0x53   :  { %635 = vmatprep.subr.bf16.mxu0 %v634_v11  ;;  %595 = vmatprep.subr.bf16.mxu1 %v663_v26  ;;  %v181_v33 = vld [vmem:[#allocation6 + $0x10] sm:$0xff]  ;;  %v194_v37 = vld [vmem:[#allocation6 + $0x78] sm:$0xff]  ;;  %v670_v49 = vld [vmem:[#allocation7 + $0x20] sm:$0xff]  }
  0x54   :  { %v185_v34 = vld [vmem:[#allocation6 + $0x30] sm:$0xff]  ;;  %v646_v42 = vpack.c.bf16 %v194_v37, %v190_v36  ;;  %v668_v47 = vld [vmem:[#allocation7 + $0x18] sm:$0xff]   ;;  %v671_v50 = vld [vmem:[#allocation7 + $0x68] sm:$0xff]  }
  0x55   :  { %624 = vmatmul.mubr.msk.f32.vlgmr.msra.gmra.mrb[0].mxu0 %vm95_vm0, %v83_v12  ;;  %v644_v39 = vpack.c.bf16 %v185_v34, %v181_v33  ;;  %v189_v43 = vld [vmem:[#allocation6 + $0x50] sm:$0xff]  ;;  %v672_v51 = vld [vmem:[#allocation7 + $0x28] sm:$0xff]   ;;  %v675_v54 = vld [vmem:[#allocation7 + $0x78] sm:$0xff]  }
  0x56   :  { %637 = vmatpush1.bf16.msra.mxu0 %v636_v13  ;;  %265 = vmatprep.mubr.f32.mxu0 %v781_v23  ;;  %v193_v44 = vld [vmem:[#allocation6 + $0x70] sm:$0xff]  ;;  %v676_v55 = vld [vmem:[#allocation7 + $0x38] sm:$0xff]  }
  0x57   :  { %639 = vmatprep.subr.bf16.mxu0 %v638_v16  ;;  %596 = vmatpush3.bf16.msra.mxu1 %v664_v27  ;;  %v648_v45 = vpack.c.bf16 %v193_v44, %v189_v43  ;;  %v673_v52 = vld [vmem:[#allocation7 + $0x70] sm:$0xff]  }
  0x58   :  { %597 = vmatprep.subr.bf16.mxu1 %v665_v28  ;;  %v674_v53 = vld [vmem:[#allocation7 + $0x30] sm:$0xff]  }
  0x59   :  { %v569_v8 = vld [vmem:[%s903_s5] ss:$0 sm:$0xff] }
  0x5a   :  { %641 = vmatpush1.bf16.msra.mxu0 %v640_v19  ;;  %v586_v14 = vld [vmem:[%s904_s6] ss:$0 sm:$0xff] }
  0x5b   :  { %643 = vmatprep.subr.bf16.mxu0 %v642_v22  ;;  %598 = vmatpush3.bf16.msra.mxu1 %v666_v29 }
  0x5c   :  { %599 = vmatprep.subr.bf16.mxu1 %v667_v30 }
  0x5f   :  { %600 = vmatpush3.bf16.msra.mxu1 %v668_v47 }
  0x60   :  { %601 = vmatprep.subr.bf16.mxu1 %v669_v48 }
  0x63   :  { %602 = vmatpush3.bf16.msra.mxu1 %v670_v49 }
  0x64   :  { %603 = vmatprep.subr.bf16.mxu1 %v671_v50 }
  0x67   :  { %604 = vmatpush3.bf16.msra.mxu1 %v672_v51 }
  0x68   :  { %605 = vmatprep.subr.bf16.mxu1 %v673_v52 }
  0x6b   :  { %606 = vmatpush3.bf16.msra.mxu1 %v674_v53 }
  0x6c   :  { %607 = vmatprep.subr.bf16.mxu1 %v675_v54 }
  0x6f   :  { %608 = vmatpush3.bf16.msra.mxu1 %v676_v55 }
 0x128   :  { %v625_v32 = vpop.f32.mrb[0].mxu0 }
 0x129   :  { %v168_v35 = vpop.f32.mrb[1].mxu0  ;;  %v174_v40 = vadd.f32 %v625_v32, %v562_v31 }
 0x12a   :  { %v169_v38 = vadd.f32 %v562_v31, %v168_v35 }
 0x12b   :  { %v178_v46 = vmax.f32 %v174_v40, 0.0 }
 0x12c   :  { %v177_v41 = vmax.f32 %v169_v38, 0.0 }
 0x12e   :  { %565 = vmatmul.mubr.msk.f32.vlgmr.msra.gmra.mrb[2].mxu0 %vm95_vm0, %v177_v41 }
 0x12f   :  { %645 = vmatpush1.bf16.msra.mxu0 %v644_v39  ;;  %271 = vmatprep.mubr.f32.mxu0 %v781_v23 }
 0x130   :  { %647 = vmatprep.subr.bf16.mxu0 %v646_v42 }
 0x132   :  { %566 = vmatmul.mubr.msk.f32.gmra.mrb[4].mxu0 %vm95_vm0, %v178_v46 }
 0x133   :  { %649 = vmatpush1.bf16.msra.mxu0 %v648_v45  ;;  %342 = vmatprep.mubr.f32.mxu0 %v781_v23 }
 0x136   :  { %567 = vmatmul.mubr.msk.f32.vlgmr.msra.gmra.mrb[6].mxu0 %vm95_vm0, %v177_v41 }
 0x137   :  { %348 = vmatprep.mubr.f32.mxu0 %v781_v23 }
 0x13a   :  { %568 = vmatmul.mubr.msk.f32.gmra.mrb[8].mxu0 %vm95_vm0, %v178_v46 }
 0x201   :  { %v267_v56 = vpop.f32.mrb[2].mxu0 }
 0x202   :  { %v269_v57 = vpop.f32.mrb[3].mxu0 }
 0x205   :  { %v273_v58 = vpop.f32.mrb[4].mxu0 }
 0x206   :  { %v275_v59 = vpop.f32.mrb[5].mxu0 }
 0x209   :  { %v344_v60 = vpop.f32.mrb[6].mxu0 }
 0x20a   :  { %v355_v61 = vmul.f32 %v344_v60, %v267_v56  ;;  %v346_v62 = vpop.f32.mrb[7].mxu0 }
 0x20b   :  { %v356_v63 = vmul.f32 %v346_v62, %v269_v57 }
 0x20d   :  { %v350_v0 = vpop.f32.mrb[8].mxu0 }
 0x20e   :  { %v357_v1 = vmul.f32 %v350_v0, %v273_v58  ;;  %v352_v2 = vpop.f32.mrb[9].mxu0 }
 0x20f   :  { %v358_v3 = vmul.f32 %v352_v2, %v275_v59 }
 0x210   :  { %v359_v4 = vpack.c.bf16 %v357_v1, %v355_v61 }
 0x211   :  { %v360_v5 = vpack.c.bf16 %v358_v3, %v356_v63 }
 0x213   :  { %528 = vmatprep.mubr.bf16.mxu1 %v360_v5 }
 0x214   :  { %529 = vmatmul.mubr.bf16.vlgmr.msra.gmra.mrb[0].mxu1 %v359_v4 }
 0x2e7   :  { %v609_v6 = vpop.f32.mrb[0].mxu1 }
 0x2e8   :  { %v610_v7 = vpop.f32.mrb[1].mxu1 }
 0x2e9   :  { %v611_v9 = vadd.f32 %v610_v7, %v609_v6  ;;  %v612_v10 = vpop.f32.mrb[2].mxu1 }
 0x2ea   :  { %v613_v11 = vpop.f32.mrb[3].mxu1 }
 0x2eb   :  { %v614_v12 = vadd.f32 %v613_v11, %v612_v10  ;;  %v531_v13 = vadd.f32 %v611_v9, %v569_v8 }
 0x2ed   :  { %v534_v15 = vadd.f32 %v614_v12, %v569_v8  ;;  %v537_v16 = vmax.f32 %v531_v13, 0.0 }
 0x2ef   :  { %v538_v17 = vmax.f32 %v534_v15, 0.0  ;;  %v546_v18 = vmul.f32 %v586_v14, %v537_v16 }
 0x2f1   :  { %548 = vadd.xlane.f32.xlu0 %v546_v18  ;;  %v547_v19 = vmul.f32 %v586_v14, %v538_v17 }
 0x2f5   :  { %550 = vadd.xlane.f32.xlu0 %v547_v19 }
 0x37e   :  { %v549_v20 = vpop.xlane.xlu0 %548 }
 0x37f   :  { %553 = vst.msk [vmem:[%s905_s7] sm:$0xff] %vm552_vm1, %v549_v20 }
 0x382   :  { %v551_v21 = vpop.xlane.xlu0 %550 }
 0x383   :  { %554 = vst.msk [vmem:[%s905_s7 + $0x8] sm:$0xff] %vm552_vm1, %v551_v21 }
 0x384   :  { %559 = vsyncpa [#allocation3], 1 }
 0x385   :  { %560 = vsyncpa [#allocation5], 1 }
 0x386   :  { %561 = vsyncpa [#allocation8], 1 }

</bundles_post_ra>
